<compile_context>
chip_gen: v7x
topology: tpu7x:2x2x1
jax: 0.10.0
libtpu: 0.0.40
codegen_flags: <defaults>
</compile_context>

<pallas_src>
import functools
import math

import jax
import jax.numpy as jnp
from jax.experimental import pallas as pl
from jax.experimental.pallas import tpu as pltpu


def _tempotron_kernel(x_ref, w_ref, o_ref, *, T, tau, tau_s, v0):
    # x_ref: [TB, N] spike times; w_ref: [N, O_pad]; o_ref: [TB, O_pad]
    x = x_ref[...]                                   # [TB, N] f32
    w = w_ref[...]                                   # [N, O_pad] f32
    TB, _ = x.shape
    O_pad = w.shape[1]

    # Bound exp arguments (never-fired neurons carry x == T; they are masked out
    # below for every t anyway, so clamping does not change the result).
    x = jnp.minimum(x, jnp.float32(T))

    # Hoisted exponentials (2*TB*N transcendentals total, independent of T).
    e1 = jnp.exp(x * jnp.float32(1.0 / tau))         # exp(s/tau)
    e2 = jnp.exp(x * jnp.float32(1.0 / tau_s))       # exp(s/tau_s)

    # Build the T PSP tiles stacked along the sublane axis -> [T*TB, N].
    tiles = []
    for t in range(T):
        c1 = jnp.float32(v0 * math.exp(-t / tau))    # trace-time constants
        c2 = jnp.float32(v0 * math.exp(-t / tau_s))
        psp_t = jnp.where(x <= jnp.float32(t), c1 * e1 - c2 * e2, jnp.float32(0.0))
        tiles.append(psp_t)
    psp_all = jnp.concatenate(tiles, axis=0)         # [T*TB, N]

    # One stacked MXU matmul for all time steps, f32 accumulation.
    v = jnp.dot(psp_all, w, preferred_element_type=jnp.float32)   # [T*TB, O_pad]
    v = v.reshape(T, TB, O_pad)
    o_ref[...] = jnp.max(v, axis=0)                  # max over time, elementwise (VPU)


def tempotron_v_max(x, w_t, *, T, tau=15.0, tau_s=15.0 / 4, v_threshold=1.0,
                    batch_tile=None):
    """x: [B, N] spike times (f32); w_t: [N, O] weights (f32, transposed vs torch)."""
    B, N = x.shape
    O = w_t.shape[1]

    # Lane-pad the output/class axis to a multiple of 128 -> lane-dense weight
    # block and unmasked output stores. Padded columns are zero => v_max there
    # is exactly 0 and simply sliced away.
    O_pad = ((O + 127) // 128) * 128
    if O_pad != O:
        w_t = jnp.pad(w_t, ((0, 0), (0, O_pad - O)))

    # Batch tiling: bounds VMEM and enables DMA pipelining / megacore sharding
    # for large batches; at the demo size this is a single tile.
    if batch_tile is None:
        batch_tile = min(B, 256)
    tb = batch_tile
    grid = (pl.cdiv(B, tb),)

    t_max = (tau * tau_s * math.log(tau / tau_s)) / (tau - tau_s)
    v0 = v_threshold / (math.exp(-t_max / tau) - math.exp(-t_max / tau_s))

    kernel = functools.partial(
        _tempotron_kernel, T=int(T), tau=float(tau), tau_s=float(tau_s), v0=float(v0)
    )

    cost = pl.CostEstimate(
        flops=2 * T * B * N * O_pad,
        transcendentals=2 * B * N,
        bytes_accessed=4 * (B * N + N * O_pad + B * O_pad),
    )

    out_padded = pl.pallas_call(
        kernel,
        out_shape=jax.ShapeDtypeStruct((B, O_pad), jnp.float32),
        grid_spec=pltpu.PrefetchScalarGridSpec(
            num_scalar_prefetch=0,
            grid=grid,
            in_specs=[
                pl.BlockSpec((tb, N), lambda i: (i, 0)),       # batch-tiled spikes
                pl.BlockSpec((N, O_pad), lambda i: (0, 0)),    # weights stay resident
            ],
            out_specs=pl.BlockSpec((tb, O_pad), lambda i: (i, 0)),
        ),
        compiler_params=pltpu.CompilerParams(
            dimension_semantics=("parallel",),                 # v7x: shard batch over 2 TCs
        ),
        cost_estimate=cost,
    )(x, w_t)

    return out_padded[:, :O]


def tempotron_v_max_ref(x, w_t, *, T, tau=15.0, tau_s=15.0 / 4, v_threshold=1.0):
    """Pure-JAX reference matching the PyTorch Tempotron forward ('v_max')."""
    t_max = (tau * tau_s * math.log(tau / tau_s)) / (tau - tau_s)
    v0 = v_threshold / (math.exp(-t_max / tau) - math.exp(-t_max / tau_s))
    t = jnp.arange(T, dtype=jnp.float32)[None, None, :]            # [1, 1, T]
    dt = t - x[:, :, None]                                         # [B, N, T]
    psp = (jnp.exp(-dt / tau) - jnp.exp(-dt / tau_s)) * (dt >= 0.0)
    v_in = psp * v0                                                # [B, N, T]
    v = jnp.einsum("bnt,no->bto", v_in, w_t)                       # [B, T, O]
    return jnp.max(v, axis=1)                                      # [B, O]


if __name__ == "__main__":
    # Net(m=1, T=8): Tempotron(784 * 1, 10, 8)
    m = 1
    T = 8
    batch = 8
    in_features = 784 * m
    out_features = 10

    key = jax.random.PRNGKey(0)
    k_x, k_w = jax.random.split(key)

    # Spike times in [0, T) (neurons that never fire would carry value T).
    x = jax.random.uniform(
        k_x, (batch, in_features), dtype=jnp.float32, minval=0.0, maxval=float(T)
    )

    # nn.Linear(in_features, out_features, bias=False) default init:
    # U(-1/sqrt(in_features), 1/sqrt(in_features)); stored transposed as [N, O].
    bound = 1.0 / math.sqrt(in_features)
    w_t = jax.random.uniform(
        k_w, (in_features, out_features), dtype=jnp.float32,
        minval=-bound, maxval=bound,
    )

    out = tempotron_v_max(x, w_t, T=T)
    out = jax.block_until_ready(out)

    ref = tempotron_v_max_ref(x, w_t, T=T)
    assert out.shape == (batch, out_features)
    assert jnp.allclose(out, ref, atol=1e-4, rtol=1e-4), "mismatch vs reference"

    print("KERNEL_OK")
</pallas_src>

<mosaic_0001>
module attributes {stable_mosaic.version = 11 : i64} {
  func.func @_tempotron_kernel(%arg0: i32, %arg1: memref<8x784xf32, #tpu.memory_space<vmem>>, %arg2: memref<784x128xf32, #tpu.memory_space<vmem>>, %arg3: memref<8x128xf32, #tpu.memory_space<vmem>>) attributes {dimension_semantics = [#tpu.dimension_semantics<parallel>], iteration_bounds = array<i64: 1>, scalar_prefetch = 0 : i64, scratch_operands = 0 : i64, tpu.core_type = #tpu.core_type<tc>, window_params = [{transform_indices = @transform_0, window_bounds = array<i64: 8, 784>}, {pipeline_mode = #tpu.pipeline_mode<synchronous>, transform_indices = @transform_1, window_bounds = array<i64: 784, 128>}, {transform_indices = @transform_2, window_bounds = array<i64: 8, 128>}]} {
    %c0 = arith.constant 0 : index
    %c0_0 = arith.constant 0 : index
    %0 = vector.load %arg1[%c0, %c0_0] : memref<8x784xf32, #tpu.memory_space<vmem>>, vector<8x784xf32>
    %c0_1 = arith.constant 0 : index
    %c0_2 = arith.constant 0 : index
    %1 = vector.load %arg2[%c0_1, %c0_2] : memref<784x128xf32, #tpu.memory_space<vmem>>, vector<784x128xf32>
    %cst = arith.constant 8.000000e+00 : f32
    %2 = vector.broadcast %cst : f32 to vector<8x784xf32>
    %3 = arith.minimumf %0, %2 : vector<8x784xf32>
    %cst_3 = arith.constant 0.0666666701 : f32
    %4 = vector.broadcast %cst_3 : f32 to vector<8x784xf32>
    %5 = arith.mulf %3, %4 : vector<8x784xf32>
    %6 = math.exp %5 : vector<8x784xf32>
    %cst_4 = arith.constant 0.266666681 : f32
    %7 = vector.broadcast %cst_4 : f32 to vector<8x784xf32>
    %8 = arith.mulf %3, %7 : vector<8x784xf32>
    %9 = math.exp %8 : vector<8x784xf32>
    %cst_5 = arith.constant 0.000000e+00 : f32
    %10 = vector.broadcast %cst_5 : f32 to vector<8x784xf32>
    %11 = arith.cmpf ole, %3, %10 : vector<8x784xf32>
    %cst_6 = arith.constant 2.11653471 : f32
    %12 = vector.broadcast %cst_6 : f32 to vector<8x784xf32>
    %13 = arith.mulf %12, %6 : vector<8x784xf32>
    %cst_7 = arith.constant 2.11653471 : f32
    %14 = vector.broadcast %cst_7 : f32 to vector<8x784xf32>
    %15 = arith.mulf %14, %9 : vector<8x784xf32>
    %16 = arith.subf %13, %15 : vector<8x784xf32>
    %cst_8 = arith.constant 0.000000e+00 : f32
    %17 = vector.broadcast %cst_8 : f32 to vector<8x784xf32>
    %18 = arith.select %11, %16, %17 : vector<8x784xi1>, vector<8x784xf32>
    %cst_9 = arith.constant 1.000000e+00 : f32
    %19 = vector.broadcast %cst_9 : f32 to vector<8x784xf32>
    %20 = arith.cmpf ole, %3, %19 : vector<8x784xf32>
    %cst_10 = arith.constant 1.98003304 : f32
    %21 = vector.broadcast %cst_10 : f32 to vector<8x784xf32>
    %22 = arith.mulf %21, %6 : vector<8x784xf32>
    %cst_11 = arith.constant 1.6211139 : f32
    %23 = vector.broadcast %cst_11 : f32 to vector<8x784xf32>
    %24 = arith.mulf %23, %9 : vector<8x784xf32>
    %25 = arith.subf %22, %24 : vector<8x784xf32>
    %cst_12 = arith.constant 0.000000e+00 : f32
    %26 = vector.broadcast %cst_12 : f32 to vector<8x784xf32>
    %27 = arith.select %20, %25, %26 : vector<8x784xi1>, vector<8x784xf32>
    %cst_13 = arith.constant 2.000000e+00 : f32
    %28 = vector.broadcast %cst_13 : f32 to vector<8x784xf32>
    %29 = arith.cmpf ole, %3, %28 : vector<8x784xf32>
    %cst_14 = arith.constant 1.85233474 : f32
    %30 = vector.broadcast %cst_14 : f32 to vector<8x784xf32>
    %31 = arith.mulf %30, %6 : vector<8x784xf32>
    %cst_15 = arith.constant 1.24165714 : f32
    %32 = vector.broadcast %cst_15 : f32 to vector<8x784xf32>
    %33 = arith.mulf %32, %9 : vector<8x784xf32>
    %34 = arith.subf %31, %33 : vector<8x784xf32>
    %cst_16 = arith.constant 0.000000e+00 : f32
    %35 = vector.broadcast %cst_16 : f32 to vector<8x784xf32>
    %36 = arith.select %29, %34, %35 : vector<8x784xi1>, vector<8x784xf32>
    %cst_17 = arith.constant 3.000000e+00 : f32
    %37 = vector.broadcast %cst_17 : f32 to vector<8x784xf32>
    %38 = arith.cmpf ole, %3, %37 : vector<8x784xf32>
    %cst_18 = arith.constant 1.73287213 : f32
    %39 = vector.broadcast %cst_18 : f32 to vector<8x784xf32>
    %40 = arith.mulf %39, %6 : vector<8x784xf32>
    %cst_19 = arith.constant 0.951020359 : f32
    %41 = vector.broadcast %cst_19 : f32 to vector<8x784xf32>
    %42 = arith.mulf %41, %9 : vector<8x784xf32>
    %43 = arith.subf %40, %42 : vector<8x784xf32>
    %cst_20 = arith.constant 0.000000e+00 : f32
    %44 = vector.broadcast %cst_20 : f32 to vector<8x784xf32>
    %45 = arith.select %38, %43, %44 : vector<8x784xi1>, vector<8x784xf32>
    %cst_21 = arith.constant 4.000000e+00 : f32
    %46 = vector.broadcast %cst_21 : f32 to vector<8x784xf32>
    %47 = arith.cmpf ole, %3, %46 : vector<8x784xf32>
    %cst_22 = arith.constant 1.6211139 : f32
    %48 = vector.broadcast %cst_22 : f32 to vector<8x784xf32>
    %49 = arith.mulf %48, %6 : vector<8x784xf32>
    %cst_23 = arith.constant 0.728413463 : f32
    %50 = vector.broadcast %cst_23 : f32 to vector<8x784xf32>
    %51 = arith.mulf %50, %9 : vector<8x784xf32>
    %52 = arith.subf %49, %51 : vector<8x784xf32>
    %cst_24 = arith.constant 0.000000e+00 : f32
    %53 = vector.broadcast %cst_24 : f32 to vector<8x784xf32>
    %54 = arith.select %47, %52, %53 : vector<8x784xi1>, vector<8x784xf32>
    %cst_25 = arith.constant 5.000000e+00 : f32
    %55 = vector.broadcast %cst_25 : f32 to vector<8x784xf32>
    %56 = arith.cmpf ole, %3, %55 : vector<8x784xf32>
    %cst_26 = arith.constant 1.51656342 : f32
    %57 = vector.broadcast %cst_26 : f32 to vector<8x784xf32>
    %58 = arith.mulf %57, %6 : vector<8x784xf32>
    %cst_27 = arith.constant 0.557912529 : f32
    %59 = vector.broadcast %cst_27 : f32 to vector<8x784xf32>
    %60 = arith.mulf %59, %9 : vector<8x784xf32>
    %61 = arith.subf %58, %60 : vector<8x784xf32>
    %cst_28 = arith.constant 0.000000e+00 : f32
    %62 = vector.broadcast %cst_28 : f32 to vector<8x784xf32>
    %63 = arith.select %56, %61, %62 : vector<8x784xi1>, vector<8x784xf32>
    %cst_29 = arith.constant 6.000000e+00 : f32
    %64 = vector.broadcast %cst_29 : f32 to vector<8x784xf32>
    %65 = arith.cmpf ole, %3, %64 : vector<8x784xf32>
    %cst_30 = arith.constant 1.41875565 : f32
    %66 = vector.broadcast %cst_30 : f32 to vector<8x784xf32>
    %67 = arith.mulf %66, %6 : vector<8x784xf32>
    %cst_31 = arith.constant 4.273210e-01 : f32
    %68 = vector.broadcast %cst_31 : f32 to vector<8x784xf32>
    %69 = arith.mulf %68, %9 : vector<8x784xf32>
    %70 = arith.subf %67, %69 : vector<8x784xf32>
    %cst_32 = arith.constant 0.000000e+00 : f32
    %71 = vector.broadcast %cst_32 : f32 to vector<8x784xf32>
    %72 = arith.select %65, %70, %71 : vector<8x784xi1>, vector<8x784xf32>
    %cst_33 = arith.constant 7.000000e+00 : f32
    %73 = vector.broadcast %cst_33 : f32 to vector<8x784xf32>
    %74 = arith.cmpf ole, %3, %73 : vector<8x784xf32>
    %cst_34 = arith.constant 1.32725585 : f32
    %75 = vector.broadcast %cst_34 : f32 to vector<8x784xf32>
    %76 = arith.mulf %75, %6 : vector<8x784xf32>
    %cst_35 = arith.constant 0.32729727 : f32
    %77 = vector.broadcast %cst_35 : f32 to vector<8x784xf32>
    %78 = arith.mulf %77, %9 : vector<8x784xf32>
    %79 = arith.subf %76, %78 : vector<8x784xf32>
    %cst_36 = arith.constant 0.000000e+00 : f32
    %80 = vector.broadcast %cst_36 : f32 to vector<8x784xf32>
    %81 = arith.select %74, %79, %80 : vector<8x784xi1>, vector<8x784xf32>
    %82 = tpu.concatenate %18, %27, %36, %45, %54, %63, %72, %81 in 0 : vector<8x784xf32>, vector<8x784xf32>, vector<8x784xf32>, vector<8x784xf32>, vector<8x784xf32>, vector<8x784xf32>, vector<8x784xf32>, vector<8x784xf32> -> vector<64x784xf32>
    %cst_37 = arith.constant dense<0.000000e+00> : vector<64x128xf32>
    %83 = tpu.matmul %82, %1, %cst_37 {dimension_numbers = #tpu.dot_dimension_numbers<[1], [0], [0], [1], [0, 0, 1, 1], [], []>} : vector<64x784xf32>, vector<784x128xf32>, vector<64x128xf32> -> vector<64x128xf32>
    %84 = vector.shape_cast %83 : vector<64x128xf32> to vector<8x8x128xf32>
    %cst_38 = arith.constant dense<0xFF800000> : vector<8x128xf32>
    %85 = vector.multi_reduction <maximumf>, %84, %cst_38 [0] : vector<8x8x128xf32> to vector<8x128xf32>
    %c0_39 = arith.constant 0 : index
    %c0_40 = arith.constant 0 : index
    %86 = vector.load %arg3[%c0_39, %c0_40] : memref<8x128xf32, #tpu.memory_space<vmem>>, vector<8x128xf32>
    tpu.vector_store %arg3[%c0_39, %c0_40], %85 {strides = array<i32>} : memref<8x128xf32, #tpu.memory_space<vmem>>, vector<8x128xf32>,
    return
  }
  func.func @transform_0(%arg0: i32) -> (i32, i32) {
    %c0_i32 = arith.constant 0 : i32
    %c0_i32_0 = arith.constant 0 : i32
    return %arg0, %c0_i32 : i32, i32
  }
  func.func @transform_1(%arg0: i32) -> (i32, i32) {
    %c0_i32 = arith.constant 0 : i32
    %c0_i32_0 = arith.constant 0 : i32
    %c0_i32_1 = arith.constant 0 : i32
    return %c0_i32, %c0_i32_0 : i32, i32
  }
  func.func @transform_2(%arg0: i32) -> (i32, i32) {
    %c0_i32 = arith.constant 0 : i32
    %c0_i32_0 = arith.constant 0 : i32
    return %arg0, %c0_i32 : i32, i32
  }
}

</mosaic_0001>

<bundles_post_ra>
// kernel: tpu_custom_call.1
= control target key start
LH: loop header
LB: loop body
LE: loop exit
PB: predicated region body
PF: predicated region fallthrough
CT: control target
= control target key end

     0   :  { %7 = vsyncpa [#allocation3], 0  ;;  %s1886_s0 = inlined_call_operand.hbm [shape: f32[8,784], index: 0, kind: input, shape index: {}]   ;;  %s1887_s1 = inlined_call_operand.hbm [shape: f32[784,128], index: 1, kind: input, shape index: {}]   ;;  %s1888_s2 = inlined_call_operand.hbm [shape: f32[8,128], index: 2, kind: output, shape index: {}]  }
   0x1   :  { %8 = vsyncpa [#allocation6], 0 }
   0x2   :  { %9 = vsyncpa [#allocation4], 0  ;;  %s1412_s9 = smov [#allocation2]   ;;  %s1413_s11 = smov [#allocation5]  }
   0x3   :  { %s16_s10 = sshll.u32 %s1412_s9, 4  ;;  %s25_s12 = sshll.u32 %s1413_s11, 4  ;;  %s17_s10 = int_to_ptr.vmem [resolvable:$true] %s16_s10  ;;  %s1432_s12 = int_to_ptr.vmem [resolvable:$true] %s25_s12 }
   0x4   :  { %s1340_s15 = scalar_lea.hbm %s1886_s0, 896 }
   0x5   :  { %p1341_p0 = scmp.ne.s32.totalorder %s1886_s0, %s1340_s15  ;;  %p1344_p1 = scmp.lt.u32.totalorder %s1340_s15, %s1886_s0 }
   0x7   :  { %p1346_p2 = pnand %p1344_p1, %p1341_p0 }
   0x9   :  { %1349 = shalt.err (!%p1346_p2)
}
   0xa   :  { %s1350_s20 = scalar_lea.vmem %s17_s10, 896  ;;  %p1355_p4 = scmp.lt.s32.totalorder %s17_s10, %s17_s10 }
   0xb   :  { %p1351_p3 = scmp.ne.s32.totalorder %s17_s10, %s1350_s20  ;;  %p1356_p5 = scmp.lt.s32.totalorder %s1350_s20, %s1350_s20 }
   0xd   :  { %p1357_p6 = por %p1356_p5, %p1355_p4 }
   0xf   :  { %p1358_p7 = pnand %p1357_p6, %p1351_p3 }
  0x11   :  { %1361 = shalt.err (!%p1358_p7)
}
  0x12   :  { %19 = dma.hbm_to_vmem [thread:$0]  %s1886_s0, 896, %s17_s10, [#allocation3]  }
  0x13   :  { %s1362_s25 = scalar_lea.hbm %s1887_s1, 12544 }
  0x14   :  { %p1363_p8 = scmp.ne.s32.totalorder %s1887_s1, %s1362_s25  ;;  %p1366_p9 = scmp.lt.u32.totalorder %s1362_s25, %s1887_s1 }
  0x16   :  { %p1368_p10 = pnand %p1366_p9, %p1363_p8 }
  0x18   :  { %1371 = shalt.err (!%p1368_p10)
}
  0x19   :  { %s1372_s30 = scalar_lea.vmem %s1432_s12, 12544  ;;  %p1377_p12 = scmp.lt.s32.totalorder %s1432_s12, %s1432_s12 }
  0x1a   :  { %p1373_p11 = scmp.ne.s32.totalorder %s1432_s12, %s1372_s30  ;;  %p1378_p13 = scmp.lt.s32.totalorder %s1372_s30, %s1372_s30 }
  0x1c   :  { %p1379_p0 = por %p1378_p13, %p1377_p12 }
  0x1e   :  { %p1380_p1 = pnand %p1379_p0, %p1373_p11 }
  0x20   :  { %1383 = shalt.err (!%p1380_p1)
}
  0x21   :  { %s1414_s0 = smov 128   ;;  %s1415_s3 = smov 8  }
  0x22   :  { %31 = dma.hbm_to_vmem [thread:$0]  %s1887_s1, 12544, %s1432_s12, [#allocation6], %s1414_s0, %s1414_s0, %s1415_s3  }
  0x23   :  { %1406 = dma.done.wait [#allocation3], 896  }
  0x24   :  { %1407 = vsyncadd [#allocation3], 4294966400 }
  0x25   :  { %1408 = dma.done.wait [#allocation6], 12544  }
  0x26   :  { %1409 = vsyncadd [#allocation6], 4294954752  ;;  %v61_v0 = vld [vmem:[#allocation5 + $0x80] sm:$0xff]  ;;  %v62_v1 = vld [vmem:[#allocation5 + $0x88] sm:$0xff]  ;;  %s1416_s1 = smov [#allocation7]  }
  0x27   :  { %v93_v2 = vld [vmem:[#allocation5 + $0x180] sm:$0xff]  ;;  %v1191_v3 = vpack.c.bf16 %v62_v1, %v61_v0  ;;  %v94_v4 = vld [vmem:[#allocation5 + $0x188] sm:$0xff]  ;;  %v63_v11 = vld [vmem:[#allocation5 + $0x90] sm:$0xff]  ;;  %s931_s6 = sshll.u32 %s1416_s1, 4  ;;  %s932_s6 = int_to_ptr.vmem [resolvable:$true] %s931_s6 }
  0x28   :  { %v45_v5 = vld [vmem:[#allocation5] sm:$0xff]  ;;  %v46_v6 = vld [vmem:[#allocation5 + $0x8] sm:$0xff]  ;;  %v1223_v7 = vpack.c.bf16 %v94_v4, %v93_v2  ;;  %v64_v13 = vld [vmem:[#allocation5 + $0x98] sm:$0xff]  ;;  %s1384_s7 = scalar_lea.vmem %s932_s6, 128  ;;  %p1389_p3 = scmp.lt.s32.totalorder %s932_s6, %s932_s6 }
  0x29   :  { %v1193_v8 = vpack.c.bf16 %v46_v6, %v45_v5  ;;  %v77_v9 = vld [vmem:[#allocation5 + $0x100] sm:$0xff]  ;;  %v78_v10 = vld [vmem:[#allocation5 + $0x108] sm:$0xff]  ;;  %1192 = vmatprep.subr.bf16.mxu0 %v1191_v3  ;;  %v95_v14 = vld [vmem:[#allocation5 + $0x190] sm:$0xff]  ;;  %v1195_v16 = vpack.c.bf16 %v64_v13, %v63_v11  ;;  %p1385_p2 = scmp.ne.s32.totalorder %s932_s6, %s1384_s7  ;;  %p1390_p4 = scmp.lt.s32.totalorder %s1384_s7, %s1384_s7 }
  0x2a   :  { %v1225_v12 = vpack.c.bf16 %v78_v10, %v77_v9  ;;  %v96_v15 = vld [vmem:[#allocation5 + $0x198] sm:$0xff]  ;;  %1224 = vmatprep.subr.bf16.mxu1 %v1223_v7  ;;  %v47_v18 = vld [vmem:[#allocation5 + $0x10] sm:$0xff]  ;;  %v65_v23 = vld [vmem:[#allocation5 + $0xa0] sm:$0xff] }
  0x2b   :  { %1194 = vmatpush3.bf16.msra.mxu0 %v1193_v8  ;;  %v1227_v17 = vpack.c.bf16 %v96_v15, %v95_v14  ;;  %v48_v19 = vld [vmem:[#allocation5 + $0x18] sm:$0xff]  ;;  %v79_v20 = vld [vmem:[#allocation5 + $0x110] sm:$0xff]  ;;  %v66_v24 = vld [vmem:[#allocation5 + $0xa8] sm:$0xff]  ;;  %p1391_p5 = por %p1390_p4, %p1389_p3 }
  0x2c   :  { %1226 = vmatpush3.bf16.msra.mxu1 %v1225_v12  ;;  %v1197_v21 = vpack.c.bf16 %v48_v19, %v47_v18  ;;  %v80_v22 = vld [vmem:[#allocation5 + $0x118] sm:$0xff]  ;;  %1196 = vmatprep.subr.bf16.mxu0 %v1195_v16  ;;  %v1199_v26 = vpack.c.bf16 %v66_v24, %v65_v23  ;;  %v97_v27 = vld [vmem:[#allocation5 + $0x1a0] sm:$0xff]  ;;  %v98_v28 = vld [vmem:[#allocation5 + $0x1a8] sm:$0xff] }
  0x2d   :  { %1228 = vmatprep.subr.bf16.mxu1 %v1227_v17  ;;  %v1229_v25 = vpack.c.bf16 %v80_v22, %v79_v20  ;;  %v49_v29 = vld [vmem:[#allocation5 + $0x20] sm:$0xff]  ;;  %v1231_v30 = vpack.c.bf16 %v98_v28, %v97_v27  ;;  %v50_v31 = vld [vmem:[#allocation5 + $0x28] sm:$0xff]  ;;  %v67_v35 = vld [vmem:[#allocation5 + $0xb0] sm:$0xff]  ;;  %p1392_p6 = pnand %p1391_p5, %p1385_p2 }
  0x2e   :  { %v81_v32 = vld [vmem:[#allocation5 + $0x120] sm:$0xff]  ;;  %v82_v33 = vld [vmem:[#allocation5 + $0x128] sm:$0xff]  ;;  %v1201_v34 = vpack.c.bf16 %v50_v31, %v49_v29  ;;  %v68_v36 = vld [vmem:[#allocation5 + $0xb8] sm:$0xff] }
  0x2f   :  { %1198 = vmatpush3.bf16.msra.mxu0 %v1197_v21  ;;  %v99_v37 = vld [vmem:[#allocation5 + $0x1b0] sm:$0xff]  ;;  %v1233_v38 = vpack.c.bf16 %v82_v33, %v81_v32  ;;  %v1203_v39 = vpack.c.bf16 %v68_v36, %v67_v35  ;;  %v100_v40 = vld [vmem:[#allocation5 + $0x1b8] sm:$0xff]  ;;  %v69_v46 = vld [vmem:[#allocation5 + $0xc0] sm:$0xff] }
  0x30   :  { %1230 = vmatpush3.bf16.msra.mxu1 %v1229_v25  ;;  %1200 = vmatprep.subr.bf16.mxu0 %v1199_v26  ;;  %v51_v41 = vld [vmem:[#allocation5 + $0x30] sm:$0xff]  ;;  %v52_v42 = vld [vmem:[#allocation5 + $0x38] sm:$0xff]  ;;  %v1235_v43 = vpack.c.bf16 %v100_v40, %v99_v37  ;;  %v70_v47 = vld [vmem:[#allocation5 + $0xc8] sm:$0xff] }
  0x31   :  { %1232 = vmatprep.subr.bf16.mxu1 %v1231_v30  ;;  %v83_v44 = vld [vmem:[#allocation5 + $0x130] sm:$0xff]  ;;  %v84_v45 = vld [vmem:[#allocation5 + $0x138] sm:$0xff]  ;;  %v101_v48 = vld [vmem:[#allocation5 + $0x1c0] sm:$0xff]  ;;  %v1205_v50 = vpack.c.bf16 %v52_v42, %v51_v41  ;;  %v1207_v52 = vpack.c.bf16 %v70_v47, %v69_v46 }
  0x32   :  { %v102_v49 = vld [vmem:[#allocation5 + $0x1c8] sm:$0xff]  ;;  %v1237_v51 = vpack.c.bf16 %v84_v45, %v83_v44  ;;  %v53_v53 = vld [vmem:[#allocation5 + $0x40] sm:$0xff]  ;;  %v71_v58 = vld [vmem:[#allocation5 + $0xd0] sm:$0xff] }
  0x33   :  { %1202 = vmatpush3.bf16.msra.mxu0 %v1201_v34  ;;  %v54_v54 = vld [vmem:[#allocation5 + $0x48] sm:$0xff]  ;;  %v85_v55 = vld [vmem:[#allocation5 + $0x140] sm:$0xff]  ;;  %v1239_v56 = vpack.c.bf16 %v102_v49, %v101_v48  ;;  %v72_v59 = vld [vmem:[#allocation5 + $0xd8] sm:$0xff] }
  0x34   :  { %1234 = vmatpush3.bf16.msra.mxu1 %v1233_v38  ;;  %1204 = vmatprep.subr.bf16.mxu0 %v1203_v39  ;;  %v86_v57 = vld [vmem:[#allocation5 + $0x148] sm:$0xff]  ;;  %v103_v60 = vld [vmem:[#allocation5 + $0x1d0] sm:$0xff]  ;;  %v104_v61 = vld [vmem:[#allocation5 + $0x1d8] sm:$0xff]  ;;  %v1209_v62 = vpack.c.bf16 %v54_v54, %v53_v53  ;;  %v1211_v2 = vpack.c.bf16 %v72_v59, %v71_v58 }
  0x35   :  { %1236 = vmatprep.subr.bf16.mxu1 %v1235_v43  ;;  %v55_v63 = vld [vmem:[#allocation5 + $0x50] sm:$0xff]  ;;  %v56_v0 = vld [vmem:[#allocation5 + $0x58] sm:$0xff]  ;;  %v1241_v1 = vpack.c.bf16 %v86_v57, %v85_v55  ;;  %v73_v5 = vld [vmem:[#allocation5 + $0xe0] sm:$0xff]  ;;  %v1243_v6 = vpack.c.bf16 %v104_v61, %v103_v60 }
  0x36   :  { %v87_v3 = vld [vmem:[#allocation5 + $0x150] sm:$0xff]  ;;  %v88_v4 = vld [vmem:[#allocation5 + $0x158] sm:$0xff]  ;;  %v74_v7 = vld [vmem:[#allocation5 + $0xe8] sm:$0xff]  ;;  %v1213_v13 = vpack.c.bf16 %v56_v0, %v55_v63 }
  0x37   :  { %1206 = vmatpush3.bf16.msra.mxu0 %v1205_v50  ;;  %v105_v8 = vld [vmem:[#allocation5 + $0x1e0] sm:$0xff]  ;;  %v106_v9 = vld [vmem:[#allocation5 + $0x1e8] sm:$0xff]  ;;  %v75_v15 = vld [vmem:[#allocation5 + $0xf0] sm:$0xff]  ;;  %v1245_v17 = vpack.c.bf16 %v88_v4, %v87_v3  ;;  %v1215_v18 = vpack.c.bf16 %v74_v7, %v73_v5 }
  0x38   :  { %1238 = vmatpush3.bf16.msra.mxu1 %v1237_v51  ;;  %1208 = vmatprep.subr.bf16.mxu0 %v1207_v52  ;;  %v57_v10 = vld [vmem:[#allocation5 + $0x60] sm:$0xff]  ;;  %v58_v11 = vld [vmem:[#allocation5 + $0x68] sm:$0xff]  ;;  %v76_v16 = vld [vmem:[#allocation5 + $0xf8] sm:$0xff]  ;;  %v1247_v23 = vpack.c.bf16 %v106_v9, %v105_v8 }
  0x39   :  { %1240 = vmatprep.subr.bf16.mxu1 %v1239_v56  ;;  %v89_v12 = vld [vmem:[#allocation5 + $0x160] sm:$0xff]  ;;  %v90_v14 = vld [vmem:[#allocation5 + $0x168] sm:$0xff]  ;;  %v107_v19 = vld [vmem:[#allocation5 + $0x1f0] sm:$0xff]  ;;  %v1217_v29 = vpack.c.bf16 %v58_v11, %v57_v10  ;;  %v1219_v40 = vpack.c.bf16 %v76_v16, %v75_v15 }
  0x3a   :  { %v108_v20 = vld [vmem:[#allocation5 + $0x1f8] sm:$0xff]  ;;  %v39_v21 = vld [vmem:[#allocation2 + $0x8] sm:$0xff]  ;;  %v41_v22 = vld [vmem:[#allocation2 + $0x18] sm:$0xff]  ;;  %v1249_v34 = vpack.c.bf16 %v90_v14, %v89_v12 }
  0x3b   :  { %1210 = vmatpush3.bf16.msra.mxu0 %v1209_v62  ;;  %v59_v24 = vld [vmem:[#allocation5 + $0x70] sm:$0xff]  ;;  %v1463_v25 = vmin.f32 %v39_v21, 8.0  ;;  %v1465_v26 = vmin.f32 %v41_v22, 8.0  ;;  %v38_v27 = vld [vmem:[#allocation2] sm:$0xff]  ;;  %v40_v28 = vld [vmem:[#allocation2 + $0x10] sm:$0xff]  ;;  %v1251_v44 = vpack.c.bf16 %v108_v20, %v107_v19 }
  0x3c   :  { %1242 = vmatpush3.bf16.msra.mxu1 %v1241_v1  ;;  %1212 = vmatprep.subr.bf16.mxu0 %v1211_v2  ;;  %v60_v30 = vld [vmem:[#allocation5 + $0x78] sm:$0xff]  ;;  %v91_v31 = vld [vmem:[#allocation5 + $0x170] sm:$0xff]  ;;  %v1467_v33 = vmin.f32 %v38_v27, 8.0  ;;  %v1471_v37 = vmin.f32 %v40_v28, 8.0  ;;  %v125_v38 = vld [vmem:[#allocation5 + $0x280] sm:$0xff] }
  0x3d   :  { %1244 = vmatprep.subr.bf16.mxu1 %v1243_v6  ;;  %v92_v32 = vld [vmem:[#allocation5 + $0x178] sm:$0xff]  ;;  %v151_v35 = vmul.f32 0.06666667, %v1463_v25  ;;  %v172_v36 = vmul.f32 0.26666668, %v1463_v25  ;;  %v126_v39 = vld [vmem:[#allocation5 + $0x288] sm:$0xff]  ;;  %v1221_v48 = vpack.c.bf16 %v60_v30, %v59_v24 }
  0x3e   :  { %v153_v41 = vmul.f32 0.06666667, %v1465_v26  ;;  %v174_v42 = vmul.f32 0.26666668, %v1465_v26  ;;  %v150_v43 = vmul.f32 0.06666667, %v1467_v33  ;;  %v1253_v51 = vpack.c.bf16 %v92_v32, %v91_v31 }
  0x3f   :  { %1214 = vmatpush3.bf16.msra.mxu0 %v1213_v13  ;;  %v159_v45 = vmul.f32 1.442695, %v151_v35  ;;  %v180_v46 = vmul.f32 1.442695, %v172_v36  ;;  %v171_v47 = vmul.f32 0.26666668, %v1467_v33  ;;  %v1255_v56 = vpack.c.bf16 %v126_v39, %v125_v38 }
  0x40   :  { %1246 = vmatpush3.bf16.msra.mxu1 %v1245_v17  ;;  %1216 = vmatprep.subr.bf16.mxu0 %v1215_v18  ;;  %v163_v49 = vmul.f32 1.442695, %v153_v41  ;;  %v184_v50 = vmul.f32 1.442695, %v174_v42  ;;  %v157_v52 = vmul.f32 1.442695, %v150_v43 }
  0x41   :  { %1248 = vmatprep.subr.bf16.mxu1 %v1247_v23  ;;  %1312 = vpow2.f32 %v159_v45  ;;  %v152_v53 = vmul.f32 0.06666667, %v1471_v37  ;;  %v178_v54 = vmul.f32 1.442695, %v171_v47  ;;  %v173_v55 = vmul.f32 0.26666668, %v1471_v37 }
  0x42   :  { %1314 = vpow2.f32 %v180_v46  ;;  %v109_v59 = vld [vmem:[#allocation5 + $0x200] sm:$0xff]  ;;  %v110_v60 = vld [vmem:[#allocation5 + $0x208] sm:$0xff]  ;;  %v127_v61 = vld [vmem:[#allocation5 + $0x290] sm:$0xff]  ;;  %vm193_vm0 = vcmp.le.f32.partialorder %v1463_v25, 0.0  ;;  %vm195_vm1 = vcmp.le.f32.partialorder %v1465_v26, 0.0  ;;  %vm192_vm2 = vcmp.le.f32.partialorder %v1467_v33, 0.0 }
  0x43   :  { %1218 = vmatpush3.bf16.msra.mxu0 %v1217_v29  ;;  %1316 = vpow2.f32 %v163_v49  ;;  %v161_v57 = vmul.f32 1.442695, %v152_v53  ;;  %v182_v58 = vmul.f32 1.442695, %v173_v55  ;;  %v128_v62 = vld [vmem:[#allocation5 + $0x298] sm:$0xff]  ;;  %v111_v0 = vld [vmem:[#allocation5 + $0x210] sm:$0xff]  ;;  %v1488_v4 = vpack.c.bf16 %v110_v60, %v109_v59 }
  0x44   :  { %1250 = vmatpush3.bf16.msra.mxu1 %v1249_v34  ;;  %1220 = vmatprep.subr.bf16.mxu0 %v1219_v40  ;;  %1318 = vpow2.f32 %v184_v50  ;;  %v112_v1 = vld [vmem:[#allocation5 + $0x218] sm:$0xff]  ;;  %vm194_vm3 = vcmp.le.f32.partialorder %v1471_v37, 0.0  ;;  %v129_v5 = vld [vmem:[#allocation5 + $0x2a0] sm:$0xff]  ;;  %v130_v6 = vld [vmem:[#allocation5 + $0x2a8] sm:$0xff]  ;;  %vm228_vm4 = vcmp.le.f32.partialorder %v1463_v25, 1.0  ;;  %vm230_vm5 = vcmp.le.f32.partialorder %v1465_v26, 1.0 }
  0x45   :  { %1252 = vmatprep.subr.bf16.mxu1 %v1251_v44  ;;  %1320 = vpow2.f32 %v157_v52  ;;  %v1495_v9 = vpack.c.bf16 %v128_v62, %v127_v61  ;;  %v113_v10 = vld [vmem:[#allocation5 + $0x220] sm:$0xff]  ;;  %v114_v11 = vld [vmem:[#allocation5 + $0x228] sm:$0xff]  ;;  %vm227_vm6 = vcmp.le.f32.partialorder %v1467_v33, 1.0  ;;  %v1503_v16 = vpack.c.bf16 %v112_v1, %v111_v0  ;;  %v131_v21 = vld [vmem:[#allocation5 + $0x2b0] sm:$0xff] }
  0x46   :  { %1322 = vpow2.f32 %v178_v54  ;;  %vm263_vm7 = vcmp.le.f32.partialorder %v1463_v25, 2.0  ;;  %v1509_v20 = vpack.c.bf16 %v130_v6, %v129_v5  ;;  %v132_v22 = vld [vmem:[#allocation5 + $0x2b8] sm:$0xff]  ;;  %vm229_vm8 = vcmp.le.f32.partialorder %v1471_v37, 1.0  ;;  %v115_v36 = vld [vmem:[#allocation5 + $0x230] sm:$0xff]  ;;  %v133_v52 = vld [vmem:[#allocation5 + $0x2c0] sm:$0xff] }
  0x47   :  { %1222 = vmatpush3.bf16.msra.mxu0 %v1221_v48  ;;  %1324 = vpow2.f32 %v161_v57  ;;  %v1517_v29 = vpack.c.bf16 %v114_v11, %v113_v10  ;;  %vm265_vm9 = vcmp.le.f32.partialorder %v1465_v26, 2.0  ;;  %v116_v38 = vld [vmem:[#allocation5 + $0x238] sm:$0xff]  ;;  %vm262_vm10 = vcmp.le.f32.partialorder %v1467_v33, 2.0  ;;  %v134_v53 = vld [vmem:[#allocation5 + $0x2c8] sm:$0xff]  ;;  %v135_v1 = vld [vmem:[#allocation5 + $0x2d0] sm:$0xff] }
  0x48   :  { %1254 = vmatpush3.bf16.msra.mxu1 %v1253_v51  ;;  %1256 = vmatprep.subr.bf16.mxu0 %v1255_v56  ;;  %1326 = vpow2.f32 %v182_v58  ;;  %vm298_vm11 = vcmp.le.f32.partialorder %v1463_v25, 3.0  ;;  %vm264_vm12 = vcmp.le.f32.partialorder %v1471_v37, 2.0  ;;  %v1546_v51 = vpack.c.bf16 %v132_v22, %v131_v21  ;;  %v117_v58 = vld [vmem:[#allocation5 + $0x240] sm:$0xff]  ;;  %v118_v59 = vld [vmem:[#allocation5 + $0x248] sm:$0xff]  ;;  %v119_v11 = vld [vmem:[#allocation5 + $0x250] sm:$0xff] }
  0x49   :  { %1291 = vmatprep.subr.bf16.mxu1 %v1255_v56  ;;  %vm300_vm13 = vcmp.le.f32.partialorder %v1465_v26, 3.0  ;;  %vm297_vm14 = vcmp.le.f32.partialorder %v1467_v33, 3.0  ;;  %v1567_v0 = vpack.c.bf16 %v116_v38, %v115_v36  ;;  %vm333_vm15 = vcmp.le.f32.partialorder %v1463_v25, 4.0 }
  0x4a   :  { %v1575_v10 = vpack.c.bf16 %v134_v53, %v133_v52 }
  0x4b   :  { %v1479_v63 = vpop.eup %1312 }
  0x4c   :  { %v1483_v2 = vpop.eup %1314  ;;  %v200_v3 = vmul.f32 2.1165347, %v1479_v63  ;;  %v235_v14 = vmul.f32 1.980033, %v1479_v63  ;;  %v270_v42 = vmul.f32 1.8523347, %v1479_v63 }
  0x4d   :  { %v1490_v7 = vpop.eup %1316  ;;  %v207_v8 = vmul.f32 2.1165347, %v1483_v2  ;;  %v242_v15 = vmul.f32 1.6211139, %v1483_v2  ;;  %v277_v43 = vmul.f32 1.2416571, %v1483_v2 }
  0x4e   :  { %v1497_v12 = vpop.eup %1318  ;;  %v202_v13 = vmul.f32 2.1165347, %v1490_v7  ;;  %v237_v27 = vmul.f32 1.980033, %v1490_v7  ;;  %v1540_v49 = vmul.f32 1.8523347, %v1490_v7 }
  0x4f   :  { %v1505_v17 = vpop.eup %1320  ;;  %v214_v18 = vsub.f32 %v200_v3, %v207_v8  ;;  %v209_v19 = vmul.f32 2.1165347, %v1497_v12  ;;  %v244_v28 = vmul.f32 1.6211139, %v1497_v12  ;;  %v249_v41 = vsub.f32 %v235_v14, %v242_v15  ;;  %v136_v3 = vld [vmem:[#allocation5 + $0x2d8] sm:$0xff] }
  0x50   :  { %v1511_v23 = vpop.eup %1322  ;;  %v199_v24 = vmul.f32 2.1165347, %v1505_v17  ;;  %v234_v34 = vmul.f32 1.980033, %v1505_v17  ;;  %v1543_v50 = vmul.f32 1.2416571, %v1497_v12  ;;  %v284_v60 = vsub.f32 %v270_v42, %v277_v43 }
  0x51   :  { %v1519_v30 = vpop.eup %1324  ;;  %941 = vmatprep.mubr.msk.f32.mxu0 %vm193_vm0, %v214_v18  ;;  %v216_v31 = vsub.f32 %v202_v13, %v209_v19  ;;  %v206_v32 = vmul.f32 2.1165347, %v1511_v23  ;;  %v241_v35 = vmul.f32 1.6211139, %v1511_v23  ;;  %v251_v48 = vsub.f32 %v237_v27, %v244_v28  ;;  %v120_v13 = vld [vmem:[#allocation5 + $0x258] sm:$0xff]  ;;  %v122_v42 = vld [vmem:[#allocation5 + $0x268] sm:$0xff] }
  0x52   :  { %v1527_v39 = vpop.eup %1326  ;;  %v201_v40 = vmul.f32 2.1165347, %v1519_v30  ;;  %v236_v46 = vmul.f32 1.980033, %v1519_v30  ;;  %v1551_v56 = vmul.f32 1.8523347, %v1505_v17  ;;  %v286_v14 = vsub.f32 %v1540_v49, %v1543_v50 }
  0x53   :  { %957 = vmatprep.mubr.msk.f32.mxu1 %vm195_vm1, %v216_v31  ;;  %v213_v44 = vsub.f32 %v199_v24, %v206_v32  ;;  %v208_v45 = vmul.f32 2.1165347, %v1527_v39  ;;  %v243_v47 = vmul.f32 1.6211139, %v1527_v39  ;;  %v248_v55 = vsub.f32 %v234_v34, %v241_v35  ;;  %v137_v32 = vld [vmem:[#allocation5 + $0x2e0] sm:$0xff]  ;;  %v138_v34 = vld [vmem:[#allocation5 + $0x2e8] sm:$0xff] }
  0x54   :  { %v1554_v57 = vmul.f32 1.2416571, %v1511_v23  ;;  %v1561_v61 = vmul.f32 1.7328721, %v1479_v63  ;;  %v1564_v62 = vmul.f32 0.95102036, %v1483_v2  ;;  %v1585_v19 = vpack.c.bf16 %v118_v59, %v117_v58 }
  0x55   :  { %942 = vmatmul.mubr.msk.f32.vlgmr.msra.gmra.mrb[0].mxu0 %vm192_vm2, %v213_v44  ;;  %v215_v54 = vsub.f32 %v201_v40, %v208_v45  ;;  %v250_v5 = vsub.f32 %v236_v46, %v243_v47  ;;  %v271_v6 = vmul.f32 1.8523347, %v1519_v30  ;;  %v278_v8 = vmul.f32 1.2416571, %v1527_v39  ;;  %v139_v43 = vld [vmem:[#allocation5 + $0x2f0] sm:$0xff]  ;;  %v140_v44 = vld [vmem:[#allocation5 + $0x2f8] sm:$0xff] }
  0x56   :  { %1258 = vmatpush3.bf16.msra.mxu0 %v1488_v4  ;;  %943 = vmatprep.mubr.msk.f32.mxu0 %vm228_vm4, %v249_v41  ;;  %v307_v15 = vmul.f32 1.7328721, %v1490_v7  ;;  %v314_v18 = vmul.f32 0.95102036, %v1497_v12  ;;  %vm299_vm0 = vcmp.le.f32.partialorder %v1471_v37, 3.0  ;;  %vm335_vm1 = vcmp.le.f32.partialorder %v1465_v26, 4.0 }
  0x57   :  { %958 = vmatmul.mubr.msk.f32.vlgmr.msra.gmra.mrb[0].mxu1 %vm194_vm3, %v215_v54  ;;  %1260 = vmatprep.subr.bf16.mxu0 %v1495_v9  ;;  %v304_v21 = vmul.f32 1.7328721, %v1505_v17  ;;  %v311_v22 = vmul.f32 0.95102036, %v1511_v23  ;;  %v1595_v24 = vpack.c.bf16 %v136_v3, %v135_v1  ;;  %v319_v27 = vsub.f32 %v1561_v61, %v1564_v62  ;;  %v121_v41 = vld [vmem:[#allocation5 + $0x260] sm:$0xff] }
  0x58   :  { %1299 = vmatpush3.bf16.msra.mxu1 %v1488_v4  ;;  %959 = vmatprep.mubr.msk.f32.mxu1 %vm230_vm5, %v251_v48  ;;  %v283_v4 = vsub.f32 %v1551_v56, %v1554_v57  ;;  %v347_v28 = vmul.f32 0.72841346, %v1483_v2  ;;  %vm332_vm2 = vcmp.le.f32.partialorder %v1467_v33, 4.0  ;;  %v1605_v31 = vpack.c.bf16 %v120_v13, %v119_v11 }
  0x59   :  { %944 = vmatmul.mubr.msk.f32.gmra.mrb[2].mxu0 %vm227_vm6, %v248_v55  ;;  %1292 = vmatprep.subr.bf16.mxu1 %v1495_v9  ;;  %v340_v9 = vmul.f32 1.6211139, %v1479_v63  ;;  %v285_v35 = vsub.f32 %v271_v6, %v278_v8  ;;  %v306_v36 = vmul.f32 1.7328721, %v1519_v30  ;;  %v313_v38 = vmul.f32 0.95102036, %v1527_v39 }
  0x5a   :  { %1262 = vmatpush3.bf16.msra.mxu0 %v1503_v16  ;;  %945 = vmatprep.mubr.msk.f32.mxu0 %vm263_vm7, %v284_v60  ;;  %v342_v40 = vmul.f32 1.6211139, %v1490_v7  ;;  %vm368_vm3 = vcmp.le.f32.partialorder %v1463_v25, 5.0  ;;  %v321_v45 = vsub.f32 %v307_v15, %v314_v18  ;;  %v349_v46 = vmul.f32 0.72841346, %v1497_v12 }
  0x5b   :  { %960 = vmatmul.mubr.msk.f32.gmra.mrb[2].mxu1 %vm229_vm8, %v250_v5  ;;  %1264 = vmatprep.subr.bf16.mxu0 %v1509_v20  ;;  %v339_v47 = vmul.f32 1.6211139, %v1505_v17  ;;  %v346_v48 = vmul.f32 0.72841346, %v1511_v23  ;;  %vm334_vm4 = vcmp.le.f32.partialorder %v1471_v37, 4.0  ;;  %v318_v49 = vsub.f32 %v304_v21, %v311_v22  ;;  %v44_v21 = vld [vmem:[#allocation2 + $0x30] sm:$0xff] }
  0x5c   :  { %1300 = vmatpush3.bf16.msra.mxu1 %v1503_v16  ;;  %961 = vmatprep.mubr.msk.f32.mxu1 %vm265_vm9, %v286_v14  ;;  %v1625_v16 = vmul.f32 1.6211139, %v1519_v30  ;;  %v348_v50 = vmul.f32 0.72841346, %v1527_v39  ;;  %v375_v52 = vmul.f32 1.5165634, %v1479_v63  ;;  %v354_v53 = vsub.f32 %v340_v9, %v347_v28 }
  0x5d   :  { %946 = vmatmul.mubr.msk.f32.gmra.mrb[4].mxu0 %vm262_vm10, %v283_v4  ;;  %1293 = vmatprep.subr.bf16.mxu1 %v1509_v20  ;;  %vm370_vm5 = vcmp.le.f32.partialorder %v1465_v26, 5.0  ;;  %v382_v54 = vmul.f32 0.5579125, %v1483_v2  ;;  %v377_v20 = vmul.f32 1.5165634, %v1490_v7  ;;  %vm367_vm6 = vcmp.le.f32.partialorder %v1467_v33, 5.0 }
  0x5e   :  { %1266 = vmatpush3.bf16.msra.mxu0 %v1517_v29  ;;  %947 = vmatprep.mubr.msk.f32.mxu0 %vm298_vm11, %v319_v27  ;;  %v384_v55 = vmul.f32 0.5579125, %v1497_v12  ;;  %v320_v56 = vsub.f32 %v306_v36, %v313_v38  ;;  %v374_v57 = vmul.f32 1.5165634, %v1505_v17  ;;  %v381_v58 = vmul.f32 0.5579125, %v1511_v23 }
  0x5f   :  { %962 = vmatmul.mubr.msk.f32.gmra.mrb[4].mxu1 %vm264_vm12, %v285_v35  ;;  %1268 = vmatprep.subr.bf16.mxu0 %v1546_v51  ;;  %v1642_v59 = vpack.c.bf16 %v138_v34, %v137_v32  ;;  %v356_v60 = vsub.f32 %v342_v40, %v349_v46  ;;  %vm369_vm7 = vcmp.le.f32.partialorder %v1471_v37, 5.0  ;;  %v1648_v61 = vpack.c.bf16 %v122_v42, %v121_v41  ;;  %v43_v14 = vld [vmem:[#allocation2 + $0x28] sm:$0xff] }
  0x60   :  { %1301 = vmatpush3.bf16.msra.mxu1 %v1517_v29  ;;  %963 = vmatprep.mubr.msk.f32.mxu1 %vm300_vm13, %v321_v45  ;;  %v1650_v62 = vpack.c.bf16 %v140_v44, %v139_v43  ;;  %v353_v1 = vsub.f32 %v339_v47, %v346_v48  ;;  %v355_v3 = vsub.f32 %v1625_v16, %v348_v50  ;;  %v376_v29 = vmul.f32 1.5165634, %v1519_v30  ;;  %v124_v43 = vld [vmem:[#allocation5 + $0x278] sm:$0xff] }
  0x61   :  { %948 = vmatmul.mubr.msk.f32.gmra.mrb[6].mxu0 %vm297_vm14, %v318_v49  ;;  %1294 = vmatprep.subr.bf16.mxu1 %v1546_v51  ;;  %v383_v5 = vmul.f32 0.5579125, %v1527_v39  ;;  %v389_v6 = vsub.f32 %v375_v52, %v382_v54  ;;  %v391_v8 = vsub.f32 %v377_v20, %v384_v55  ;;  %v410_v11 = vmul.f32 1.4187557, %v1479_v63  ;;  %v42_v51 = vld [vmem:[#allocation2 + $0x20] sm:$0xff]  ;;  %v141_v54 = vld [vmem:[#allocation5 + $0x300] sm:$0xff] }
  0x62   :  { %1270 = vmatpush3.bf16.msra.mxu0 %v1567_v0  ;;  %949 = vmatprep.mubr.msk.f32.mxu0 %vm333_vm15, %v354_v53  ;;  %v417_v13 = vmul.f32 0.427321, %v1483_v2  ;;  %v388_v15 = vsub.f32 %v374_v57, %v381_v58  ;;  %vm403_vm8 = vcmp.le.f32.partialorder %v1463_v25, 6.0  ;;  %v412_v18 = vmul.f32 1.4187557, %v1490_v7  ;;  %v142_v20 = vld [vmem:[#allocation5 + $0x308] sm:$0xff] }
  0x63   :  { %964 = vmatmul.mubr.msk.f32.gmra.mrb[6].mxu1 %vm299_vm0, %v320_v56  ;;  %1272 = vmatprep.subr.bf16.mxu0 %v1575_v10  ;;  %v419_v4 = vmul.f32 0.427321, %v1497_v12  ;;  %vm405_vm9 = vcmp.le.f32.partialorder %v1465_v26, 6.0  ;;  %vm402_vm10 = vcmp.le.f32.partialorder %v1467_v33, 6.0  ;;  %v409_v22 = vmul.f32 1.4187557, %v1505_v17 }
  0x64   :  { %1302 = vmatpush3.bf16.msra.mxu1 %v1567_v0  ;;  %965 = vmatprep.mubr.msk.f32.mxu1 %vm335_vm1, %v356_v60  ;;  %v416_v27 = vmul.f32 0.427321, %v1511_v23  ;;  %v390_v9 = vsub.f32 %v376_v29, %v383_v5  ;;  %v411_v28 = vmul.f32 1.4187557, %v1519_v30  ;;  %v418_v0 = vmul.f32 0.427321, %v1527_v39 }
  0x65   :  { %950 = vmatmul.mubr.msk.f32.gmra.mrb[8].mxu0 %vm332_vm2, %v353_v1  ;;  %1295 = vmatprep.subr.bf16.mxu1 %v1575_v10  ;;  %v445_v32 = vmul.f32 1.3272558, %v1479_v63  ;;  %v424_v34 = vsub.f32 %v410_v11, %v417_v13  ;;  %v452_v35 = vmul.f32 0.32729727, %v1483_v2  ;;  %v447_v36 = vmul.f32 1.3272558, %v1490_v7 }
  0x66   :  { %1274 = vmatpush3.bf16.msra.mxu0 %v1585_v19  ;;  %951 = vmatprep.mubr.msk.f32.mxu0 %vm368_vm3, %v389_v6  ;;  %v1687_v38 = vmin.f32 %v43_v14, 8.0  ;;  %v426_v10 = vsub.f32 %v412_v18, %v419_v4  ;;  %v454_v63 = vmul.f32 0.32729727, %v1497_v12  ;;  %v444_v40 = vmul.f32 1.3272558, %v1505_v17 }
  0x67   :  { %966 = vmatmul.mubr.msk.f32.gmra.mrb[8].mxu1 %vm334_vm4, %v355_v3  ;;  %1276 = vmatprep.subr.bf16.mxu0 %v1595_v24  ;;  %v1694_v41 = vmin.f32 %v42_v51, 8.0  ;;  %vm438_vm11 = vcmp.le.f32.partialorder %v1463_v25, 7.0  ;;  %v1702_v42 = vmin.f32 %v44_v21, 8.0  ;;  %v423_v12 = vsub.f32 %v409_v22, %v416_v27 }
  0x68   :  { %1303 = vmatpush3.bf16.msra.mxu1 %v1585_v19  ;;  %967 = vmatprep.mubr.msk.f32.mxu1 %vm370_vm5, %v391_v8  ;;  %v155_v2 = vmul.f32 0.06666667, %v1687_v38  ;;  %v176_v7 = vmul.f32 0.26666668, %v1687_v38  ;;  %v451_v17 = vmul.f32 0.32729727, %v1511_v23  ;;  %v459_v46 = vsub.f32 %v445_v32, %v452_v35 }
  0x69   :  { %952 = vmatmul.mubr.msk.f32.gmra.mrb[10].mxu0 %vm367_vm6, %v388_v15  ;;  %1296 = vmatprep.subr.bf16.mxu1 %v1595_v24  ;;  %v123_v19 = vld [vmem:[#allocation5 + $0x270] sm:$0xff]  ;;  %v154_v44 = vmul.f32 0.06666667, %v1694_v41  ;;  %v175_v45 = vmul.f32 0.26666668, %v1694_v41  ;;  %v425_v23 = vsub.f32 %v411_v28, %v418_v0  ;;  %vm404_vm12 = vcmp.le.f32.partialorder %v1471_v37, 6.0 }
  0x6a   :  { %1278 = vmatpush3.bf16.msra.mxu0 %v1605_v31  ;;  %953 = vmatprep.mubr.msk.f32.mxu0 %vm403_vm8, %v424_v34  ;;  %v446_v47 = vmul.f32 1.3272558, %v1519_v30  ;;  %v167_v48 = vmul.f32 1.442695, %v155_v2  ;;  %v188_v49 = vmul.f32 1.442695, %v176_v7  ;;  %v461_v30 = vsub.f32 %v447_v36, %v454_v63 }
  0x6b   :  { %968 = vmatmul.mubr.msk.f32.gmra.mrb[10].mxu1 %vm369_vm7, %v390_v9  ;;  %1280 = vmatprep.subr.bf16.mxu0 %v1642_v59  ;;  %v453_v24 = vmul.f32 0.32729727, %v1527_v39  ;;  %v165_v16 = vmul.f32 1.442695, %v154_v44  ;;  %v186_v50 = vmul.f32 1.442695, %v175_v45  ;;  %v458_v39 = vsub.f32 %v444_v40, %v451_v17 }
  0x6c   :  { %1304 = vmatpush3.bf16.msra.mxu1 %v1605_v31  ;;  %969 = vmatprep.mubr.msk.f32.mxu1 %vm405_vm9, %v426_v10  ;;  %1328 = vpow2.f32 %v167_v48  ;;  %v156_v52 = vmul.f32 0.06666667, %v1702_v42  ;;  %vm440_vm13 = vcmp.le.f32.partialorder %v1465_v26, 7.0  ;;  %v177_v31 = vmul.f32 0.26666668, %v1702_v42 }
  0x6d   :  { %954 = vmatmul.mubr.msk.f32.gmra.mrb[12].mxu0 %vm402_vm10, %v423_v12  ;;  %1297 = vmatprep.subr.bf16.mxu1 %v1642_v59  ;;  %1330 = vpow2.f32 %v188_v49  ;;  %vm437_vm14 = vcmp.le.f32.partialorder %v1467_v33, 7.0  ;;  %v1285_v53 = vpack.c.bf16 %v124_v43, %v123_v19  ;;  %v460_v56 = vsub.f32 %v446_v47, %v453_v24 }
  0x6e   :  { %1282 = vmatpush3.bf16.msra.mxu0 %v1648_v61  ;;  %955 = vmatprep.mubr.msk.f32.mxu0 %vm438_vm11, %v459_v46  ;;  %1332 = vpow2.f32 %v165_v16  ;;  %v169_v55 = vmul.f32 1.442695, %v156_v52  ;;  %v190_v57 = vmul.f32 1.442695, %v177_v31  ;;  %vm439_vm15 = vcmp.le.f32.partialorder %v1471_v37, 7.0 }
  0x6f   :  { %970 = vmatmul.mubr.msk.f32.gmra.mrb[12].mxu1 %vm404_vm12, %v425_v23  ;;  %1284 = vmatprep.subr.bf16.mxu0 %v1650_v62  ;;  %1334 = vpow2.f32 %v186_v50  ;;  %v1740_v25 = vpack.c.bf16 %v142_v20, %v141_v54  ;;  %vm197_vm0 = vcmp.le.f32.partialorder %v1687_v38, 0.0  ;;  %vm407_vm1 = vcmp.le.f32.partialorder %v1687_v38, 6.0 }
  0x70   :  { %1305 = vmatpush3.bf16.msra.mxu1 %v1648_v61  ;;  %971 = vmatprep.mubr.msk.f32.mxu1 %vm440_vm13, %v461_v30  ;;  %1336 = vpow2.f32 %v169_v55  ;;  %vm196_vm2 = vcmp.le.f32.partialorder %v1694_v41, 0.0  ;;  %vm406_vm3 = vcmp.le.f32.partialorder %v1694_v41, 6.0  ;;  %vm232_vm4 = vcmp.le.f32.partialorder %v1687_v38, 1.0 }
  0x71   :  { %956 = vmatmul.mubr.msk.f32.gmra.mrb[14].mxu0 %vm437_vm14, %v458_v39  ;;  %1298 = vmatprep.subr.bf16.mxu1 %v1650_v62  ;;  %1338 = vpow2.f32 %v190_v57  ;;  %vm442_vm5 = vcmp.le.f32.partialorder %v1687_v38, 7.0  ;;  %vm231_vm6 = vcmp.le.f32.partialorder %v1694_v41, 1.0  ;;  %vm441_vm7 = vcmp.le.f32.partialorder %v1694_v41, 7.0 }
  0x72   :  { %1286 = vmatpush3.bf16.msra.mxu0 %v1285_v53  ;;  %vm198_vm8 = vcmp.le.f32.partialorder %v1702_v42, 0.0  ;;  %vm267_vm9 = vcmp.le.f32.partialorder %v1687_v38, 2.0  ;;  %vm472_vm10 = vcmask 130048   ;;  %vm233_vm11 = vcmp.le.f32.partialorder %v1702_v42, 1.0 }
  0x73   :  { %972 = vmatmul.mubr.msk.f32.gmra.mrb[14].mxu1 %vm439_vm15, %v460_v56  ;;  %vm268_vm12 = vcmp.le.f32.partialorder %v1702_v42, 2.0  ;;  %vm266_vm13 = vcmp.le.f32.partialorder %v1694_v41, 2.0  ;;  %vm302_vm14 = vcmp.le.f32.partialorder %v1687_v38, 3.0  ;;  %vm303_vm15 = vcmp.le.f32.partialorder %v1702_v42, 3.0 }
  0x74   :  { %1306 = vmatpush3.bf16.msra.mxu1 %v1285_v53 }
  0x75   :  { %1288 = vmatprep.subr.bf16.mxu1 %v1740_v25 }
  0x76   :  { %v1745_v26 = vpop.eup %1328 }
  0x77   :  { %v1751_v33 = vpop.eup %1330  ;;  %v204_v37 = vmul.f32 2.1165347, %v1745_v26  ;;  %v414_v58 = vmul.f32 1.4187557, %v1745_v26  ;;  %v239_v59 = vmul.f32 1.980033, %v1745_v26 }
  0x78   :  { %v1759_v60 = vpop.eup %1332  ;;  %v211_v61 = vmul.f32 2.1165347, %v1751_v33  ;;  %v421_v62 = vmul.f32 0.427321, %v1751_v33  ;;  %v246_v1 = vmul.f32 1.6211139, %v1751_v33 }
  0x79   :  { %v1766_v3 = vpop.eup %1334  ;;  %v203_v29 = vmul.f32 2.1165347, %v1759_v60  ;;  %v413_v5 = vmul.f32 1.4187557, %v1759_v60  ;;  %v449_v6 = vmul.f32 1.3272558, %v1745_v26 }
  0x7a   :  { %v1771_v8 = vpop.eup %1336  ;;  %v218_v11 = vsub.f32 %v204_v37, %v211_v61  ;;  %v428_v13 = vsub.f32 %v414_v58, %v421_v62  ;;  %v210_v14 = vmul.f32 2.1165347, %v1766_v3  ;;  %v420_v51 = vmul.f32 0.427321, %v1766_v3 }
  0x7b   :  { %v1776_v15 = vpop.eup %1338  ;;  %v253_v18 = vsub.f32 %v239_v59, %v246_v1  ;;  %v456_v4 = vmul.f32 0.32729727, %v1751_v33  ;;  %v238_v21 = vmul.f32 1.980033, %v1759_v60  ;;  %v245_v22 = vmul.f32 1.6211139, %v1766_v3 }
  0x7c   :  { %973 = vmatprep.mubr.msk.f32.mxu0 %vm197_vm0, %v218_v11  ;;  %985 = vmatprep.mubr.msk.f32.mxu1 %vm407_vm1, %v428_v13  ;;  %v217_v27 = vsub.f32 %v203_v29, %v210_v14  ;;  %v427_v9 = vsub.f32 %v413_v5, %v420_v51  ;;  %v448_v28 = vmul.f32 1.3272558, %v1759_v60  ;;  %v455_v0 = vmul.f32 0.32729727, %v1766_v3 }
  0x7d   :  { %v463_v32 = vsub.f32 %v449_v6, %v456_v4  ;;  %v252_v34 = vsub.f32 %v238_v21, %v245_v22  ;;  %v274_v35 = vmul.f32 1.8523347, %v1745_v26  ;;  %v281_v36 = vmul.f32 1.2416571, %v1751_v33 }
  0x7e   :  { %vm338_vm0 = vcmp.le.f32.partialorder %v1702_v42, 4.0  ;;  %974 = vmatmul.mubr.msk.f32.vlgmr.msra.gmra.mrb[16].mxu0 %vm196_vm2, %v217_v27  ;;  %986 = vmatmul.mubr.msk.f32.vlgmr.msra.gmra.mrb[16].mxu1 %vm406_vm3, %v427_v9  ;;  %v462_v10 = vsub.f32 %v448_v28, %v455_v0  ;;  %v205_v63 = vmul.f32 2.1165347, %v1771_v8  ;;  %v212_v40 = vmul.f32 2.1165347, %v1776_v15 }
  0x7f   :  { %v273_v2 = vmul.f32 1.8523347, %v1759_v60  ;;  %975 = vmatprep.mubr.msk.f32.mxu0 %vm232_vm4, %v253_v18  ;;  %987 = vmatprep.mubr.msk.f32.mxu1 %vm442_vm5, %v463_v32  ;;  %v288_v7 = vsub.f32 %v274_v35, %v281_v36  ;;  %v280_v12 = vmul.f32 1.2416571, %v1766_v3  ;;  %v240_v17 = vmul.f32 1.980033, %v1771_v8 }
  0x80   :  { %v247_v19 = vmul.f32 1.6211139, %v1776_v15  ;;  %vm301_vm1 = vcmp.le.f32.partialorder %v1694_v41, 3.0  ;;  %1290 = vmatpush3.bf16.msra.mxu1 %v1740_v25  ;;  %v219_v43 = vsub.f32 %v205_v63, %v212_v40  ;;  %v309_v44 = vmul.f32 1.7328721, %v1745_v26 }
  0x81   :  { %v316_v45 = vmul.f32 0.95102036, %v1751_v33  ;;  %v275_v46 = vmul.f32 1.8523347, %v1771_v8  ;;  %vm337_vm2 = vcmp.le.f32.partialorder %v1687_v38, 4.0  ;;  %vm373_vm3 = vcmp.le.f32.partialorder %v1702_v42, 5.0 }
  0x82   :  { %v287_v47 = vsub.f32 %v273_v2, %v280_v12  ;;  %v254_v48 = vsub.f32 %v240_v17, %v247_v19  ;;  %v282_v49 = vmul.f32 1.2416571, %v1776_v15  ;;  %v308_v23 = vmul.f32 1.7328721, %v1759_v60  ;;  %976 = vmatmul.mubr.msk.f32.gmra.mrb[18].mxu0 %vm231_vm6, %v252_v34  ;;  %988 = vmatmul.mubr.msk.f32.gmra.mrb[18].mxu1 %vm441_vm7, %v462_v10 }
  0x83   :  { %v226_v24 = vsel %vm198_vm8, %v219_v43, 0.0  ;;  %v323_v16 = vsub.f32 %v309_v44, %v316_v45  ;;  %v315_v50 = vmul.f32 0.95102036, %v1766_v3  ;;  %v310_v30 = vmul.f32 1.7328721, %v1771_v8  ;;  %977 = vmatprep.mubr.msk.f32.mxu0 %vm267_vm9, %v288_v7 }
  0x84   :  { %1179 = vmatprep.mubr.msk.f32.mxu1 %vm472_vm10, %v226_v24  ;;  %v261_v52 = vsel %vm233_vm11, %v254_v48, 0.0  ;;  %v289_v39 = vsub.f32 %v275_v46, %v282_v49  ;;  %v317_v31 = vmul.f32 0.95102036, %v1776_v15  ;;  %v344_v53 = vmul.f32 1.6211139, %v1745_v26 }
  0x85   :  { %v351_v54 = vmul.f32 0.72841346, %v1751_v33  ;;  %v345_v20 = vmul.f32 1.6211139, %v1771_v8  ;;  %v352_v55 = vmul.f32 0.72841346, %v1776_v15  ;;  %v322_v58 = vsub.f32 %v308_v23, %v315_v50 }
  0x86   :  { %v296_v56 = vsel %vm268_vm12, %v289_v39, 0.0  ;;  %v324_v57 = vsub.f32 %v310_v30, %v317_v31  ;;  %v343_v25 = vmul.f32 1.6211139, %v1759_v60  ;;  %v350_v37 = vmul.f32 0.72841346, %v1766_v3  ;;  %978 = vmatmul.mubr.msk.f32.gmra.mrb[20].mxu0 %vm266_vm13, %v287_v47  ;;  %1180 = vmatmul.mubr.msk.f32.vlgmr.msra.gmra.mrb[20].mxu1 %vm472_vm10, %v261_v52 }
  0x87   :  { %v359_v59 = vsub.f32 %v345_v20, %v352_v55  ;;  %v380_v61 = vmul.f32 1.5165634, %v1771_v8  ;;  %v387_v62 = vmul.f32 0.5579125, %v1776_v15  ;;  %979 = vmatprep.mubr.msk.f32.mxu0 %vm302_vm14, %v323_v16  ;;  %1182 = vmatprep.mubr.msk.f32.mxu1 %vm472_vm10, %v296_v56  ;;  %v358_v29 = vsub.f32 %v344_v53, %v351_v54 }
  0x88   :  { %v331_v1 = vsel %vm303_vm15, %v324_v57, 0.0  ;;  %v379_v5 = vmul.f32 1.5165634, %v1745_v26  ;;  %v386_v6 = vmul.f32 0.5579125, %v1751_v33  ;;  %v357_v18 = vsub.f32 %v343_v25, %v350_v37 }
  0x89   :  { %v366_v11 = vsel %vm338_vm0, %v359_v59, 0.0  ;;  %v394_v13 = vsub.f32 %v380_v61, %v387_v62  ;;  %v415_v14 = vmul.f32 1.4187557, %v1771_v8  ;;  %v422_v51 = vmul.f32 0.427321, %v1776_v15 }
  0x8a   :  { %vm408_vm4 = vcmp.le.f32.partialorder %v1702_v42, 6.0  ;;  %v450_v4 = vmul.f32 1.3272558, %v1771_v8  ;;  %980 = vmatmul.mubr.msk.f32.gmra.mrb[22].mxu0 %vm301_vm1, %v322_v58  ;;  %1183 = vmatmul.mubr.msk.f32.gmra.mrb[22].mxu1 %vm472_vm10, %v331_v1  ;;  %v378_v33 = vmul.f32 1.5165634, %v1759_v60  ;;  %vm336_vm5 = vcmp.le.f32.partialorder %v1694_v41, 4.0 }
  0x8b   :  { %v429_v26 = vsub.f32 %v415_v14, %v422_v51  ;;  %v385_v21 = vmul.f32 0.5579125, %v1766_v3  ;;  %v457_v22 = vmul.f32 0.32729727, %v1776_v15  ;;  %981 = vmatprep.mubr.msk.f32.mxu0 %vm337_vm2, %v358_v29  ;;  %1185 = vmatprep.mubr.msk.f32.mxu1 %vm472_vm10, %v366_v11  ;;  %v401_v8 = vsel %vm373_vm3, %v394_v13, 0.0 }
  0x8c   :  { %v393_v27 = vsub.f32 %v379_v5, %v386_v6  ;;  %vm372_vm6 = vcmp.le.f32.partialorder %v1687_v38, 5.0  ;;  %vm443_vm7 = vcmp.le.f32.partialorder %v1702_v42, 7.0  ;;  %vm371_vm8 = vcmp.le.f32.partialorder %v1694_v41, 5.0 }
  0x8d   :  { %v436_v9 = vsel %vm408_vm4, %v429_v26, 0.0  ;;  %v464_v60 = vsub.f32 %v450_v4, %v457_v22  ;;  %v392_v3 = vsub.f32 %v378_v33, %v385_v21 }
  0x8e   :  { %982 = vmatmul.mubr.msk.f32.gmra.mrb[24].mxu0 %vm336_vm5, %v357_v18  ;;  %1186 = vmatmul.mubr.msk.f32.gmra.mrb[24].mxu1 %vm472_vm10, %v401_v8 }
  0x8f   :  { %983 = vmatprep.mubr.msk.f32.mxu0 %vm372_vm6, %v393_v27  ;;  %1188 = vmatprep.mubr.msk.f32.mxu1 %vm472_vm10, %v436_v9  ;;  %v471_v15 = vsel %vm443_vm7, %v464_v60, 0.0 }
  0x92   :  { %984 = vmatmul.mubr.msk.f32.gmra.mrb[26].mxu0 %vm371_vm8, %v392_v3  ;;  %1189 = vmatmul.mubr.msk.f32.gmra.mrb[26].mxu1 %vm472_vm10, %v471_v15 }
 0x128   :  { %v1029_v28 = vpop.f32.mrb[0].mxu0 }
 0x129   :  { %v1030_v0 = vpop.f32.mrb[1].mxu0 }
 0x12a   :  { %v1085_v38 = vpop.f32.mrb[0].mxu1  ;;  %v1031_v32 = vadd.f32 %v1030_v0, %v1029_v28 }
 0x12b   :  { %v1086_v34 = vpop.f32.mrb[1].mxu1 }
 0x12c   :  { %v1087_v42 = vadd.f32 %v1086_v34, %v1085_v38  ;;  %v1032_v35 = vpop.f32.mrb[2].mxu0 }
 0x12d   :  { %v1033_v36 = vpop.f32.mrb[3].mxu0 }
 0x12e   :  { %v669_v10 = vadd.f32 %v1087_v42, %v1031_v32  ;;  %v1088_v63 = vpop.f32.mrb[2].mxu1  ;;  %v1034_v40 = vadd.f32 %v1033_v36, %v1032_v35 }
 0x12f   :  { %v1089_v2 = vpop.f32.mrb[3].mxu1 }
 0x130   :  { %v1090_v7 = vadd.f32 %v1089_v2, %v1088_v63  ;;  %v1035_v12 = vpop.f32.mrb[4].mxu0 }
 0x131   :  { %v1036_v17 = vpop.f32.mrb[5].mxu0 }
 0x132   :  { %v674_v41 = vadd.f32 %v1090_v7, %v1034_v40  ;;  %v1091_v19 = vpop.f32.mrb[4].mxu1  ;;  %v1037_v43 = vadd.f32 %v1036_v17, %v1035_v12 }
 0x133   :  { %v1092_v44 = vpop.f32.mrb[5].mxu1 }
 0x134   :  { %v1093_v45 = vadd.f32 %v1092_v44, %v1091_v19  ;;  %v1038_v46 = vpop.f32.mrb[6].mxu0 }
 0x135   :  { %v1039_v47 = vpop.f32.mrb[7].mxu0 }
 0x136   :  { %v679_v48 = vadd.f32 %v1093_v45, %v1037_v43  ;;  %v1094_v49 = vpop.f32.mrb[6].mxu1  ;;  %v1040_v23 = vadd.f32 %v1039_v47, %v1038_v46 }
 0x137   :  { %v1095_v24 = vpop.f32.mrb[7].mxu1 }
 0x138   :  { %v1096_v16 = vadd.f32 %v1095_v24, %v1094_v49  ;;  %v1041_v50 = vpop.f32.mrb[8].mxu0 }
 0x139   :  { %v1042_v30 = vpop.f32.mrb[9].mxu0 }
 0x13a   :  { %v684_v52 = vadd.f32 %v1096_v16, %v1040_v23  ;;  %v1097_v39 = vpop.f32.mrb[8].mxu1  ;;  %v1043_v31 = vadd.f32 %v1042_v30, %v1041_v50 }
 0x13b   :  { %v1098_v53 = vpop.f32.mrb[9].mxu1 }
 0x13c   :  { %v1099_v54 = vadd.f32 %v1098_v53, %v1097_v39  ;;  %v1044_v20 = vpop.f32.mrb[10].mxu0 }
 0x13d   :  { %v1045_v55 = vpop.f32.mrb[11].mxu0 }
 0x13e   :  { %v689_v56 = vadd.f32 %v1099_v54, %v1043_v31  ;;  %v1100_v57 = vpop.f32.mrb[10].mxu1  ;;  %v1046_v25 = vadd.f32 %v1045_v55, %v1044_v20 }
 0x13f   :  { %v1101_v37 = vpop.f32.mrb[11].mxu1 }
 0x140   :  { %v1102_v58 = vadd.f32 %v1101_v37, %v1100_v57  ;;  %v1047_v59 = vpop.f32.mrb[12].mxu0 }
 0x141   :  { %v1048_v61 = vpop.f32.mrb[13].mxu0 }
 0x142   :  { %v694_v62 = vadd.f32 %v1102_v58, %v1046_v25  ;;  %v1103_v1 = vpop.f32.mrb[12].mxu1  ;;  %v1049_v29 = vadd.f32 %v1048_v61, %v1047_v59 }
 0x143   :  { %v1104_v5 = vpop.f32.mrb[13].mxu1 }
 0x144   :  { %v1105_v6 = vadd.f32 %v1104_v5, %v1103_v1  ;;  %v1050_v11 = vpop.f32.mrb[14].mxu0 }
 0x145   :  { %v1051_v13 = vpop.f32.mrb[15].mxu0 }
 0x146   :  { %v699_v14 = vadd.f32 %v1105_v6, %v1049_v29  ;;  %v1106_v51 = vpop.f32.mrb[14].mxu1  ;;  %v1052_v18 = vadd.f32 %v1051_v13, %v1050_v11 }
 0x147   :  { %v1107_v4 = vpop.f32.mrb[15].mxu1 }
 0x148   :  { %v1108_v26 = vadd.f32 %v1107_v4, %v1106_v51 }
 0x14a   :  { %v704_v33 = vadd.f32 %v1108_v26, %v1052_v18 }
 0x151   :  { %v1141_v21 = vpop.f32.mrb[16].mxu0  ;;  %v1159_v22 = vpop.f32.mrb[16].mxu1 }
 0x152   :  { %v1142_v8 = vpop.f32.mrb[17].mxu0  ;;  %v1160_v27 = vpop.f32.mrb[17].mxu1 }
 0x153   :  { %v1143_v9 = vadd.f32 %v1142_v8, %v1141_v21  ;;  %v1161_v60 = vadd.f32 %v1160_v27, %v1159_v22 }
 0x155   :  { %v1144_v3 = vpop.f32.mrb[18].mxu0  ;;  %v1162_v15 = vpop.f32.mrb[18].mxu1  ;;  %v774_v28 = vadd.f32 %v1143_v9, %v669_v10  ;;  %v804_v0 = vadd.f32 %v1161_v60, %v699_v14 }
 0x156   :  { %v1145_v38 = vpop.f32.mrb[19].mxu0  ;;  %v1163_v32 = vpop.f32.mrb[19].mxu1 }
 0x157   :  { %v1146_v34 = vadd.f32 %v1145_v38, %v1144_v3  ;;  %v1164_v42 = vadd.f32 %v1163_v32, %v1162_v15 }
 0x159   :  { %v1147_v35 = vpop.f32.mrb[20].mxu0  ;;  %v779_v36 = vadd.f32 %v1146_v34, %v674_v41  ;;  %v1181_v63 = vpop.f32.mrb[20].mxu1  ;;  %v809_v40 = vadd.f32 %v1164_v42, %v704_v33 }
 0x15a   :  { %v1148_v2 = vpop.f32.mrb[21].mxu0  ;;  %v878_v7 = vpop.f32.mrb[21].mxu1 }
 0x15b   :  { %v884_v12 = vadd.f32 %v1181_v63, %v779_v36  ;;  %v1149_v17 = vadd.f32 %v1148_v2, %v1147_v35  ;;  %v879_v19 = vadd.f32 %v878_v7, %v774_v28 }
 0x15d   :  { %v1150_v43 = vpop.f32.mrb[22].mxu0  ;;  %v1184_v44 = vpop.f32.mrb[22].mxu1  ;;  %v784_v45 = vadd.f32 %v1149_v17, %v679_v48 }
 0x15e   :  { %v1151_v46 = vpop.f32.mrb[23].mxu0  ;;  %v888_v47 = vpop.f32.mrb[23].mxu1 }
 0x15f   :  { %v1152_v10 = vadd.f32 %v1151_v46, %v1150_v43  ;;  %v889_v49 = vadd.f32 %v888_v47, %v784_v45 }
 0x161   :  { %v789_v23 = vadd.f32 %v1152_v10, %v684_v52  ;;  %v1153_v24 = vpop.f32.mrb[24].mxu0  ;;  %v1187_v16 = vpop.f32.mrb[24].mxu1 }
 0x162   :  { %v1154_v50 = vpop.f32.mrb[25].mxu0  ;;  %v898_v30 = vpop.f32.mrb[25].mxu1 }
 0x163   :  { %v1155_v41 = vadd.f32 %v1154_v50, %v1153_v24  ;;  %v894_v39 = vadd.f32 %v1184_v44, %v789_v23 }
 0x165   :  { %v794_v31 = vadd.f32 %v1155_v41, %v689_v56  ;;  %v1156_v53 = vpop.f32.mrb[26].mxu0  ;;  %v1190_v54 = vpop.f32.mrb[26].mxu1 }
 0x166   :  { %v914_v20 = vadd.f32 %v1190_v54, %v809_v40  ;;  %v1157_v55 = vpop.f32.mrb[27].mxu0  ;;  %v908_v57 = vpop.f32.mrb[27].mxu1 }
 0x167   :  { %v899_v25 = vadd.f32 %v898_v30, %v794_v31  ;;  %v1158_v37 = vadd.f32 %v1157_v55, %v1156_v53  ;;  %v909_v48 = vadd.f32 %v908_v57, %v804_v0 }
 0x168   :  { %v920_v58 = vmax.f32 %v894_v39, %v914_v20 }
 0x169   :  { %v917_v59 = vmax.f32 %v879_v19, %v899_v25  ;;  %v799_v61 = vadd.f32 %v1158_v37, %v694_v62  ;;  %v919_v1 = vmax.f32 %v889_v49, %v909_v48 }
 0x16b   :  { %v904_v52 = vadd.f32 %v1187_v16, %v799_v61  ;;  %v922_v29 = vmax.f32 %v919_v1, %v920_v58 }
 0x16d   :  { %v918_v5 = vmax.f32 %v884_v12, %v904_v52 }
 0x16f   :  { %v921_v6 = vmax.f32 %v917_v59, %v918_v5 }
 0x171   :  { %v923_v11 = vmax.f32 %v921_v6, %v922_v29 }
 0x173   :  { %924 = vst [vmem:[#allocation7] sm:$0xff] %v923_v11 }
 0x174   :  { %1395 = shalt.err (!%p1392_p6)
}
 0x175   :  { %s1396_s10 = scalar_lea.hbm %s1888_s2, 128 }
 0x176   :  { %p1397_p7 = scmp.ne.s32.totalorder %s1888_s2, %s1396_s10  ;;  %p1400_p8 = scmp.lt.u32.totalorder %s1396_s10, %s1888_s2 }
 0x178   :  { %p1402_p9 = pnand %p1400_p8, %p1397_p7 }
 0x17a   :  { %1405 = shalt.err (!%p1402_p9)
}
 0x17b   :  { %934 = dma.vmem_to_hbm [thread:$0]  %s932_s6, 128, %s1888_s2, [#allocation4]  }
 0x17c   :  { %1410 = dma.done.wait [#allocation4], 128  }
 0x17d   :  { %1411 = vsyncadd [#allocation4], 4294967168 }
 0x17e   :  { %938 = vsyncpa [#allocation3], 1 }
 0x17f   :  { %939 = vsyncpa [#allocation6], 1 }
 0x180   :  { %940 = vsyncpa [#allocation4], 1 }

</bundles_post_ra>
